<compile_context>
chip_gen: v5e
topology: v5e:2x2
jax: 0.10.0
libtpu: 0.0.40
codegen_flags: <defaults>
</compile_context>

<pallas_src>
import jax
import jax.numpy as jnp
from jax.experimental import pallas as pl
from jax.experimental.pallas import tpu as pltpu


_LANE_CHUNK = 512  # pixels per in-kernel slab: 48ch x 512 lanes f32 ~= 24 live vregs


def head_kernel(x_ref, w1t_ref, b1_ref, w2t_ref, b2_ref, o_ref):
    # x_ref:   (Cin, tm)          w1t_ref: (Cmid, Cin)   b1: (Cmid, 1)
    # w2t_ref: (Cout, Cmid)       b2:      (Cout, 1)     o_ref: (Cout, tm)
    tm = x_ref.shape[-1]
    # Static slab width (tm is always a multiple of 128, see wrapper).
    if tm <= _LANE_CHUNK:
        chunk = tm
    elif tm % 512 == 0:
        chunk = 512
    elif tm % 256 == 0:
        chunk = 256
    else:
        chunk = 128
    n_chunks = tm // chunk

    w1t = w1t_ref[...]
    b1 = b1_ref[...]
    w2t = w2t_ref[...]
    b2 = b2_ref[...]

    def body(c, carry):
        start = pl.multiple_of(c * chunk, chunk)
        x = x_ref[:, pl.ds(start, chunk)]                               # (Cin, chunk)
        # BN scale already folded into w1t; only the bias remains.
        h = jnp.dot(w1t, x, preferred_element_type=jnp.float32) + b1    # (Cmid, chunk)
        h = jnp.maximum(h, 0.0)                                         # ReLU
        o = jnp.dot(w2t, h.astype(w2t.dtype),
                    preferred_element_type=jnp.float32) + b2            # (Cout, chunk)
        o_ref[:, pl.ds(start, chunk)] = o.astype(o_ref.dtype)
        return carry

    jax.lax.fori_loop(0, n_chunks, body, 0, unroll=(n_chunks <= 8))


def _round_up(x, m):
    return ((x + m - 1) // m) * m


def mobilenetv3_head(x_nchw, w1, bn_scale, bn_bias, w2, b2,
                     *, tm_target=2048, min_grid_steps=8):
    """x_nchw: (N, C_in, H, W). Returns (N, C_out, H, W) in x_nchw.dtype.

    w1: (Cin, Cmid)   bn_scale/bn_bias: (Cmid,) or (1, Cmid)
    w2: (Cmid, Cout)  b2: (Cout,) or (1, Cout)
    """
    N, Cin, H, W = x_nchw.shape
    Cmid = w1.shape[1]
    Cout = w2.shape[1]
    HW = H * W
    act_dtype = x_nchw.dtype

    # Pixel-axis tile: lane-dense multiple of 128. No padding of the data —
    # a ragged last tile is handled by Pallas' boundary masking.
    tm_target = max(128, (int(tm_target) // 128) * 128)
    tm = min(tm_target, _round_up(HW, 128))
    n_tiles = pl.cdiv(HW, tm)
    # Keep both v7x TensorCores busy at small shapes (cheap on v5e/v6e too).
    while tm > 128 and N * n_tiles < min_grid_steps:
        tm = max(128, _round_up(tm // 2, 128))
        n_tiles = pl.cdiv(HW, tm)

    # Channels-first is already the layout the kernel wants: free reshape only.
    x3 = x_nchw.reshape(N, Cin, HW)

    # BN (eval mode) folded exactly into the first conv weight:
    #   y = relu((w1 * scale)^T x + (beta - mean*scale))
    w1t = jnp.transpose(w1 * jnp.reshape(bn_scale, (1, Cmid))).astype(act_dtype)  # (Cmid, Cin)
    b1 = jnp.reshape(bn_bias, (Cmid, 1)).astype(jnp.float32)
    w2t = jnp.transpose(w2).astype(act_dtype)                                     # (Cout, Cmid)
    b2c = jnp.reshape(b2, (Cout, 1)).astype(jnp.float32)

    grid = (N, n_tiles)
    bytes_per_el = jnp.dtype(act_dtype).itemsize
    cost = pl.CostEstimate(
        flops=2 * N * HW * (Cin * Cmid + Cmid * Cout),
        transcendentals=0,
        bytes_accessed=(bytes_per_el * N * HW * (Cin + Cout)
                        + 4 * (Cin * Cmid + Cmid * Cout + Cmid + Cout)),
    )

    out3 = pl.pallas_call(
        head_kernel,
        out_shape=jax.ShapeDtypeStruct((N, Cout, HW), act_dtype),
        grid_spec=pltpu.PrefetchScalarGridSpec(
            num_scalar_prefetch=0,
            grid=grid,
            in_specs=[
                # x: one batch element, all channels, tm pixels on the lane axis.
                pl.BlockSpec((None, Cin, tm), lambda n, j: (n, 0, j)),
                # Folded weight / bias operands: constant blocks, stay resident.
                pl.BlockSpec((Cmid, Cin), lambda n, j: (0, 0)),
                pl.BlockSpec((Cmid, 1), lambda n, j: (0, 0)),
                pl.BlockSpec((Cout, Cmid), lambda n, j: (0, 0)),
                pl.BlockSpec((Cout, 1), lambda n, j: (0, 0)),
            ],
            out_specs=pl.BlockSpec((None, Cout, tm), lambda n, j: (n, 0, j)),
        ),
        compiler_params=pltpu.CompilerParams(
            dimension_semantics=("parallel", "parallel")),
        cost_estimate=cost,
    )(x3, w1t, b1, w2t, b2c)

    # Free reshape (no transpose) back to NCHW.
    return out3.reshape(N, Cout, H, W)


if __name__ == "__main__":
    # Shapes consistent with the module: num_filters=16 -> C_in = 16 + 32 = 48.
    num_filters = 16
    output_channel = 4
    N, H, W = 2, 16, 16
    Cin = num_filters + 32

    key = jax.random.PRNGKey(0)
    kx, k1, kg, kb, km, kv, k2, kb2 = jax.random.split(key, 8)

    x = jax.random.normal(kx, (N, Cin, H, W), dtype=jnp.float32)

    # ConvBnRelu params (1x1 conv, bias=False) stored as (C_in, C_mid).
    w1 = jax.random.normal(k1, (Cin, num_filters), dtype=jnp.float32) * 0.1
    gamma = 1.0 + 0.1 * jax.random.normal(kg, (num_filters,), dtype=jnp.float32)
    beta = 0.1 * jax.random.normal(kb, (num_filters,), dtype=jnp.float32)
    running_mean = 0.1 * jax.random.normal(km, (num_filters,), dtype=jnp.float32)
    running_var = jnp.abs(jax.random.normal(kv, (num_filters,), dtype=jnp.float32)) + 0.5
    eps = 1e-5
    bn_scale = gamma / jnp.sqrt(running_var + eps)          # (Cmid,)
    bn_bias = beta - running_mean * bn_scale                 # (Cmid,)

    # Final 1x1 conv with bias.
    w2 = jax.random.normal(k2, (num_filters, output_channel), dtype=jnp.float32) * 0.1
    b2 = 0.1 * jax.random.normal(kb2, (output_channel,), dtype=jnp.float32)

    out = mobilenetv3_head(x, w1, bn_scale, bn_bias, w2, b2)
    out = jax.block_until_ready(out)

    # Pure-JAX reference (conv1x1 -> BN(eval) -> ReLU -> conv1x1 + bias).
    x2 = jnp.transpose(x, (0, 2, 3, 1)).reshape(-1, Cin)
    h_ref = jnp.maximum(x2 @ w1 * bn_scale[None, :] + bn_bias[None, :], 0.0)
    ref = (h_ref @ w2 + b2[None, :]).reshape(N, H, W, output_channel).transpose(0, 3, 1, 2)
    assert out.shape == (N, output_channel, H, W)
    # Slightly relaxed vs 1e-4: BN fold changes rounding order of a few f32 ops.
    assert jnp.allclose(out, ref, atol=2e-4, rtol=2e-4), float(jnp.max(jnp.abs(out - ref)))

    print("KERNEL_OK")
</pallas_src>

<mosaic_0001>
module attributes {stable_mosaic.version = 11 : i64} {
  func.func @head_kernel(%arg0: i32, %arg1: i32, %arg2: memref<1x48x128xf32, #tpu.memory_space<vmem>>, %arg3: memref<16x48xf32, #tpu.memory_space<vmem>>, %arg4: memref<16x1xf32, #tpu.memory_space<vmem>>, %arg5: memref<4x16xf32, #tpu.memory_space<vmem>>, %arg6: memref<4x1xf32, #tpu.memory_space<vmem>>, %arg7: memref<1x4x128xf32, #tpu.memory_space<vmem>>) attributes {dimension_semantics = [#tpu.dimension_semantics<parallel>, #tpu.dimension_semantics<parallel>], iteration_bounds = array<i64: 2, 2>, scalar_prefetch = 0 : i64, scratch_operands = 0 : i64, tpu.core_type = #tpu.core_type<tc>, window_params = [{transform_indices = @transform_0, window_bounds = array<i64: 1, 48, 128>}, {pipeline_mode = #tpu.pipeline_mode<synchronous>, transform_indices = @transform_1, window_bounds = array<i64: 16, 48>}, {pipeline_mode = #tpu.pipeline_mode<synchronous>, transform_indices = @transform_2, window_bounds = array<i64: 16, 1>}, {pipeline_mode = #tpu.pipeline_mode<synchronous>, transform_indices = @transform_3, window_bounds = array<i64: 4, 16>}, {pipeline_mode = #tpu.pipeline_mode<synchronous>, transform_indices = @transform_4, window_bounds = array<i64: 4, 1>}, {transform_indices = @transform_5, window_bounds = array<i64: 1, 4, 128>}]} {
    %c0 = arith.constant 0 : index
    %c0_0 = arith.constant 0 : index
    %0 = vector.load %arg3[%c0, %c0_0] : memref<16x48xf32, #tpu.memory_space<vmem>>, vector<16x48xf32>
    %c0_1 = arith.constant 0 : index
    %c0_2 = arith.constant 0 : index
    %1 = vector.load %arg4[%c0_1, %c0_2] : memref<16x1xf32, #tpu.memory_space<vmem>>, vector<16x1xf32>
    %c0_3 = arith.constant 0 : index
    %c0_4 = arith.constant 0 : index
    %2 = vector.load %arg5[%c0_3, %c0_4] : memref<4x16xf32, #tpu.memory_space<vmem>>, vector<4x16xf32>
    %c0_5 = arith.constant 0 : index
    %c0_6 = arith.constant 0 : index
    %3 = vector.load %arg6[%c0_5, %c0_6] : memref<4x1xf32, #tpu.memory_space<vmem>>, vector<4x1xf32>
    %c0_i32 = arith.constant 0 : i32
    %c128_i32 = arith.constant 128 : i32
    %4 = arith.muli %c0_i32, %c128_i32 : i32
    %5 = tpu.assume_multiple %4, 128 : i32
    %c0_7 = arith.constant 0 : index
    %c0_8 = arith.constant 0 : index
    %6 = arith.index_cast %5 : i32 to index
    %7 = vector.load %arg2[%c0_7, %c0_8, %6] : memref<1x48x128xf32, #tpu.memory_space<vmem>>, vector<1x48x128xf32>
    %8 = vector.shape_cast %7 : vector<1x48x128xf32> to vector<48x128xf32>
    %cst = arith.constant dense<0.000000e+00> : vector<16x128xf32>
    %9 = tpu.matmul %0, %8, %cst {dimension_numbers = #tpu.dot_dimension_numbers<[1], [0], [0], [1], [0, 0, 1, 1], [], []>} : vector<16x48xf32>, vector<48x128xf32>, vector<16x128xf32> -> vector<16x128xf32>
    %10 = vector.broadcast %1 : vector<16x1xf32> to vector<16x128xf32>
    %11 = arith.addf %9, %10 : vector<16x128xf32>
    %cst_9 = arith.constant 0.000000e+00 : f32
    %12 = vector.broadcast %cst_9 : f32 to vector<16x128xf32>
    %13 = arith.maximumf %11, %12 : vector<16x128xf32>
    %cst_10 = arith.constant dense<0.000000e+00> : vector<4x128xf32>
    %14 = tpu.matmul %2, %13, %cst_10 {dimension_numbers = #tpu.dot_dimension_numbers<[1], [0], [0], [1], [0, 0, 1, 1], [], []>} : vector<4x16xf32>, vector<16x128xf32>, vector<4x128xf32> -> vector<4x128xf32>
    %15 = vector.broadcast %3 : vector<4x1xf32> to vector<4x128xf32>
    %16 = arith.addf %14, %15 : vector<4x128xf32>
    %c0_11 = arith.constant 0 : index
    %c0_12 = arith.constant 0 : index
    %17 = arith.index_cast %5 : i32 to index
    %18 = vector.load %arg7[%c0_11, %c0_12, %17] : memref<1x4x128xf32, #tpu.memory_space<vmem>>, vector<1x4x128xf32>
    %19 = vector.shape_cast %18 : vector<1x4x128xf32> to vector<4x128xf32>
    %20 = vector.shape_cast %16 : vector<4x128xf32> to vector<1x4x128xf32>
    tpu.vector_store %arg7[%c0_11, %c0_12, %17], %20 {strides = array<i32>} : memref<1x4x128xf32, #tpu.memory_space<vmem>>, vector<1x4x128xf32>,
    %c1_i32 = arith.constant 1 : i32
    return
  }
  func.func @transform_0(%arg0: i32, %arg1: i32) -> (i32, i32, i32) {
    %c0_i32 = arith.constant 0 : i32
    %c0_i32_0 = arith.constant 0 : i32
    return %arg0, %c0_i32, %arg1 : i32, i32, i32
  }
  func.func @transform_1(%arg0: i32, %arg1: i32) -> (i32, i32) {
    %c0_i32 = arith.constant 0 : i32
    %c0_i32_0 = arith.constant 0 : i32
    %c0_i32_1 = arith.constant 0 : i32
    return %c0_i32, %c0_i32_0 : i32, i32
  }
  func.func @transform_2(%arg0: i32, %arg1: i32) -> (i32, i32) {
    %c0_i32 = arith.constant 0 : i32
    %c0_i32_0 = arith.constant 0 : i32
    %c0_i32_1 = arith.constant 0 : i32
    return %c0_i32, %c0_i32_0 : i32, i32
  }
  func.func @transform_3(%arg0: i32, %arg1: i32) -> (i32, i32) {
    %c0_i32 = arith.constant 0 : i32
    %c0_i32_0 = arith.constant 0 : i32
    %c0_i32_1 = arith.constant 0 : i32
    return %c0_i32, %c0_i32_0 : i32, i32
  }
  func.func @transform_4(%arg0: i32, %arg1: i32) -> (i32, i32) {
    %c0_i32 = arith.constant 0 : i32
    %c0_i32_0 = arith.constant 0 : i32
    %c0_i32_1 = arith.constant 0 : i32
    return %c0_i32, %c0_i32_0 : i32, i32
  }
  func.func @transform_5(%arg0: i32, %arg1: i32) -> (i32, i32, i32) {
    %c0_i32 = arith.constant 0 : i32
    %c0_i32_0 = arith.constant 0 : i32
    return %arg0, %c0_i32, %arg1 : i32, i32, i32
  }
}

</mosaic_0001>

<bundles_post_ra>
// kernel: tpu_custom_call.1
= control target key start
LH: loop header
LB: loop body
LE: loop exit
PB: predicated region body
PF: predicated region fallthrough
CT: control target
= control target key end

     0   :  { %10 = vsyncpa [#allocation3], 0  ;;  %s882_s0 = inlined_call_operand.hbm [shape: f32[2,48,256], index: 0, kind: input, shape index: {}]   ;;  %s883_s1 = inlined_call_operand.vmem [shape: f32[16,48], index: 1, kind: input, shape index: {}]   ;;  %s884_s2 = inlined_call_operand.vmem [shape: f32[16,1], index: 2, kind: input, shape index: {}]   ;;  %s885_s3 = inlined_call_operand.vmem [shape: f32[4,16], index: 3, kind: input, shape index: {}]   ;;  %s886_s4 = inlined_call_operand.vmem [shape: f32[4,1], index: 4, kind: input, shape index: {}]   ;;  %s887_s5 = inlined_call_operand.hbm [shape: f32[2,4,256], index: 5, kind: output, shape index: {}]  }
   0x1   :  { %12 = vsyncpa [#allocation3 + $0x1], 0 }
   0x2   :  { %13 = vsyncpa [#allocation4], 0 }
   0x3   :  { %15 = vsyncpa [#allocation4 + $0x1], 0  ;;  %s721_s18 = smov 0   ;;  %s723_s19 = smov 0  }
   0x4   :  { %s725_s20 = smov 0   ;;  %s727_s21 = smov 0  }
   0x5   :  { %s729_s22 = smov 0   ;;  %s731_s23 = smov 0  }
   0x6   :  { %s733_s24 = smov 0   ;;  %s735_s25 = smov 0  }
   0x7 LB: > { %892 = sst [smem:[#allocation8_spill]] %s665_s20  ;;  %s449_s26 = sadd.s32 4294967295, %s685_s25   ;;  %s685_s25 = sphi %s735_s25, %s21_s25   ;;  %s681_s24 = sphi %s733_s24, %s911_s24   ;;  %s677_s23 = sphi %s731_s23, %s910_s23   ;;  %s673_s22 = sphi %s729_s22, %s909_s22   ;;  %s669_s21 = sphi %s727_s21, %s908_s21   ;;  %s665_s20 = sphi %s725_s20, %s903_s20   ;;  %s661_s19 = sphi %s723_s19, %s907_s19   ;;  %s657_s18 = sphi %s721_s18, %s906_s18  }
   0x8   : > { %s450_s27 = sadd.s32 4294967294, %s685_s25   ;;  %s30_s28 = sadd.s32 1, %s677_s23 }
   0x9   : > { %s33_s29 = sadd.s32 1, %s681_s24  ;;  %p31_p0 = scmp.ge.s32.totalorder %s30_s28, 2 }
   0xa   : > { %s42_s30 = sadd.s32 1, %s665_s20  ;;  %p49_p1 = scmp.ne.s32.totalorder %s665_s20, %s661_s19 }
   0xb   : > { %p50_p2 = scmp.eq.s32.totalorder %s685_s25, 0  ;;  %s913_s28 = smov (%p31_p0, %s30_s28), 0 }
   0xc   : > { %893 = sst [smem:[#allocation9_spill]] %s913_s28  ;;  %s915_s29 = smov (!%p31_p0, %s33_s29), %s681_s24 }
   0xd   : > { %s38_s6 = ssub.s32 %s677_s23, %s913_s28  ;;  %p774_p3 = por %p50_p2, %p49_p1 }
   0xe   : > { %p35_p4 = scmp.ge.s32.totalorder %s915_s29, 2  ;;  %p55_p5 = scmp.ne.s32.totalorder %s661_s19, %s657_s18 }
   0xf   : > { %p56_p6 = scmp.eq.s32.totalorder %s449_s26, 0  ;;  %p165_p7 = scmp.eq.s32.totalorder %s449_s26, 3 }
  0x10   : > { %s917_s29 = smov (%p35_p4, %s915_s29), 0  ;;  %p171_p10 = scmp.eq.s32.totalorder %s450_s27, 3 }
  0x11   : > { %895 = sst [smem:[#allocation10_spill]] %s917_s29  ;;  %p782_p8 = por %p56_p6, %p55_p5 }
  0x12   : > { %p786_p9 = por %p165_p7, %p49_p1  ;;  %s37_s10 = ssub.s32 %s681_s24, %s917_s29 }
  0x13   : > { %s39_s11 = sor.u32 %s38_s6, %s37_s10  ;;  %p792_p12 = por %p171_p10, %p55_p5 }
  0x14   : > { %p40_p11 = scmp.eq.s32.totalorder %s39_s11, 0  ;;  %p485_p13 = scmp.lt.s32.totalorder %s685_s25, 4 }
  0x15   : > { %s898_s12 = scalar_select %p792_p12, 1, 0 }
  0x16   : > { %s203_s13 = sand.u32 1, %s665_s20   ;;  %s471_s16 = smul.u32 12, %s681_s24 }
  0x17   : > { %899 = sst [smem:[#allocation11_spill]] %s898_s12  ;;  %s470_s15 = smul.u32 48, %s203_s13 }
  0x18   : > { %s799_s14 = scalar_select %p40_p11, %s665_s20, %s42_s30  }
  0x19   : > { %p478_p0 = pnand %p485_p13, %p774_p3  ;;  %s211_s17 = sadd.s32 %s677_s23, %s471_s16 }
  0x1a   : > { %900 = sst [smem:[#allocation12_spill]] %s799_s14  ;;  %s207_s26 = scalar_lea.vmem [#allocation2], %s470_s15 }
  0x1b   : > { %s216_s29 = sshll.u32 %s207_s26, 4  ;;  %s453_s27 = sshll.u32 %s211_s17, 3  ;;  %s217_s29 = int_to_ptr.vmem [resolvable:$true] %s216_s29 }
  0x1c   : > { %s213_s11 = scalar_lea.hbm %s882_s0, %s453_s27  ;;  %s204_s12 = scalar_lea.sflag [#allocation3], %s203_s13 }
  0x1d   : > { %s214_s28 = sshll.u32 %s213_s11, 4  ;;  %s687_s30 = smov 256   ;;  %s215_s28 = int_to_ptr.hbm [resolvable:$true] %s214_s28 }
  0x1e   : > { %s688_s14 = smov 128   ;;  %s689_s20 = smov 8  }
  0x1f   : > { %480 = dma.hbm_to_vmem [thread:$0]  (!%p478_p0), %s215_s28, 768, %s217_s29, %s204_s12, %s687_s30, %s688_s14, %s689_s20  }
  0x20   : > { %p454_p1 = scmp.ge.s32.totalorder %s685_s25, 1  ;;  %p224_p2 = scmp.lt.s32.totalorder %s685_s25, 5 }
  0x22   : > { %p225_p4 = pnand %p454_p1, %p224_p2 }
  0x23   : > { %s811_s7 = sand.u32 (!%p225_p4), 1, %s661_s19  }
  0x24   : > { %228 = sbr.rel (%p225_p4) target bundleno = 325 (0x145), region = 40  ;;  %s231_s16 = scalar_lea.sflag (!%p225_p4), [#allocation3], %s811_s7 }
  0x25   : > { %s472_s15 = smul.u32 (!%p225_p4), 48, %s811_s7 }
  0x27   : > { %s234_s17 = scalar_lea.vmem (!%p225_p4), [#allocation2], %s472_s15 }
  0x29   : > { %648 = dma.done.wait (%p782_p8), %s231_s16, 768  }
  0x2a   : > { %650 = vsyncadd (%p782_p8), %s231_s16, 4294966528  ;;  %v690_v0 = vmov 0   ;;  %v273_v1 = vld [vmem:[%s234_s17 + $0x28] sm:$0xff]  ;;  %v272_v2 = vld [vmem:[%s234_s17 + $0x20] sm:$0xff]  ;;  %vm284_vm0 = vcmask 392192   ;;  %vm321_vm1 = vcmask 130048  }
  0x2b   : > { %555 = vset.pattern.permute.xlu0 %v690_v0  ;;  %556 = vset.pattern.permute.xlu1 %v690_v0  ;;  %v271_v3 = vld [vmem:[%s234_s17 + $0x18] sm:$0xff]  ;;  %v270_v5 = vld [vmem:[%s234_s17 + $0x10] sm:$0xff]  ;;  %v269_v6 = vld [vmem:[%s234_s17 + $0x8] sm:$0xff]  ;;  %s460_s30 = sshll.u32 %s673_s22, 1  ;;  %s455_s16 = sshll.u32 %s811_s7, 2 }
  0x2c   : > { %301 = vmatpush.msra.mxu0 %v273_v1  ;;  %464 = vmatpush.msra.mxu2 %v273_v1  ;;  %v265_v4 = vld [vmem:[%s884_s2 + $0x8] sm:$0xff]  ;;  %v268_v7 = vld [vmem:[%s234_s17] sm:$0xff]  ;;  %s357_s15 = sadd.s32 %s669_s21, %s460_s30  ;;  %s261_s8 = scalar_lea.vmem [#allocation5], %s455_s16 }
  0x2d   : > { %281 = vperm.xlu0 %555, %v265_v4   ;;  %v262_v8 = vld [vmem:[%s883_s1] sm:$0xff]  ;;  %v263_v9 = vld [vmem:[%s883_s1 + $0x8] sm:$0xff]  ;;  %s461_s17 = sshll.u32 %s357_s15, 2  ;;  %s361_s12 = sshll.u32 %s261_s8, 4  ;;  %s362_s12 = int_to_ptr.vmem [resolvable:$true] %s361_s12 }
  0x2e   : > { %302 = vmatpush.msra.mxu0 %v272_v2  ;;  %465 = vmatpush.msra.mxu2 %v272_v2  ;;  %v264_v10 = vld [vmem:[%s884_s2] sm:$0xff]  ;;  %s359_s29 = scalar_lea.hbm %s887_s5, %s461_s17  ;;  %s347_s14 = scalar_lea.sflag [#allocation4], %s811_s7 }
  0x2f   : > { %v267_v11 = vld [vmem:[%s886_s4] sm:$0xf]  ;;  %s363_s13 = sshll.u32 %s359_s29, 4  ;;  %s607_s6 = scalar_lea.hbm %s887_s5, 16  ;;  %s364_s13 = int_to_ptr.hbm [resolvable:$true] %s363_s13 }
  0x30   : > { %303 = vmatpush.msra.mxu0 %v271_v3  ;;  %466 = vmatpush.msra.mxu2 %v271_v3  ;;  %v266_v20 = vld [vmem:[%s885_s3] sm:$0xf]  ;;  %s601_s26 = sshra.s32 %s364_s13, 4  ;;  %s602_s26 = int_to_ptr.hbm [resolvable:$true] %s601_s26 }
  0x31   : > { %318 = vperm.xlu1 %556, %v267_v11   ;;  %s603_s21 = scalar_lea.hbm %s602_s26, 4  ;;  %p608_p7 = scmp.lt.s32.totalorder %s602_s26, %s887_s5 }
  0x32   : > { %304 = vmatpush.msra.mxu0 %v270_v5  ;;  %467 = vmatpush.msra.mxu2 %v270_v5  ;;  %p604_p3 = scmp.ne.s32.totalorder %s602_s26, %s603_s21  ;;  %p609_p8 = scmp.lt.s32.totalorder %s607_s6, %s603_s21 }
  0x34   : > { %305 = vmatpush.msra.mxu0 %v269_v6  ;;  %468 = vmatpush.msra.mxu2 %v269_v6  ;;  %p605_p5 = pnand %p604_p3, %p786_p9  ;;  %p610_p10 = por %p609_p8, %p608_p7 }
  0x35   : > { %276 = vperm.xlu0 %555, %v264_v10  }
  0x36   : > { %306 = vmatpush.msra.mxu0 %v268_v7  ;;  %469 = vmatpush.msra.mxu2 %v268_v7  ;;  %p606_p6 = pneg %p605_p5 }
  0x37   : > { %456 = vmatmul.msk.f32.vlgmr.msra.gmra.mxu0 %vm284_vm0, %v262_v8  ;;  %457 = vmatmul.msk.f32.vlgmr.msra.gmra.mxu2 %vm284_vm0, %v263_v9 }
  0x38   : > { %p611_p11 = pnand %p610_p10, %p606_p6 }
  0x9f   : > { %v282_v12 = vpop.permute.xlu0 %281 }
  0xa3   : > { %v319_v21 = vpop.permute.xlu1 %318 }
  0xa7   : > { %v277_v13 = vpop.permute.xlu0 %276 }
  0xb4   : > { %v308_v14 = vpop.f32.mrf.mxu0 }
  0xb5   : > { %v309_v16 = vadd.f32 %v308_v14, %v277_v13 }
  0xb7   : > { %v314_v19 = vmax.f32 %v309_v16, 0.0 }
  0xba   : > { %v311_v15 = vpop.f32.mrf.mxu2 }
  0xbb   : > { %v312_v17 = vadd.f32 %v311_v15, %v282_v12 }
  0xbd   : > { %v315_v18 = vmax.f32 %v312_v17, 0.0 }
  0xbf   : > { %339 = vmatpush.msra.mxu1 %v315_v18 }
  0xc1   : > { %340 = vmatpush.msra.mxu1 %v314_v19 }
  0xc2   : > { %458 = vmatmul.msk.f32.vlgmr.msra.gmra.mxu1 %vm321_vm1, %v266_v20 }
 0x13f   : > { %v342_v22 = vpop.f32.mrf.mxu1 }
 0x140   : > { %v343_v23 = vadd.f32 %v342_v22, %v319_v21 }
 0x142   : > { %345 = vst [vmem:[%s261_s8] sm:$0xf] %v343_v23 }
 0x143   : > { %614 = shalt.err (!%p611_p11)
}
 0x144   : > { %475 = dma.vmem_to_hbm [thread:$0]  (%p786_p9), %s362_s12, 64, %s364_s13, %s347_s14  }
 0x145 PF: > { %p486_p13 = scmp.ge.s32.totalorder %s685_s25, 2  ;;  %s375_s30 = sand.u32 1, %s657_s18  }
 0x146   : > { %s376_s15 = scalar_lea.sflag [#allocation4], %s375_s30 }
 0x147   : > { %p482_p0 = pnand %p486_p13, %p792_p12 }
 0x149   : > { %p483_p1 = pneg %p482_p0 }
 0x14b   : > { %652 = dma.done.wait (%p483_p1), %s376_s15, 64  }
 0x14c   : > { %654 = vsyncadd (%p483_p1), %s376_s15, 4294967232  ;;  %s21_s25 = sadd.s32 1, %s685_s25   ;;  %s902_s16 = sld [smem:[#allocation8_spill]] }
 0x14d   : > { %p18_p2 = scmp.ge.s32.totalorder %s21_s25, 6   ;;  %s903_s20 = sld [smem:[#allocation12_spill]] }
 0x14e   : > { %s904_s9 = sld [smem:[#allocation9_spill]]  ;;  %s906_s18 = smov %s661_s19 }
 0x14f   : > { %s905_s17 = sld [smem:[#allocation10_spill]]  ;;  %s908_s21 = smov %s677_s23 }
 0x150   : > { %s909_s22 = smov %s681_s24 }
 0x151   :  { %20 = sbr.rel (!%p18_p2) target bundleno = 7 (0x7), region = 85 }
 0x152   : > { %s907_s19 = smov %s902_s16 }
 0x154   : > { %s910_s23 = smov %s904_s9 }
 0x155   : > { %s911_s24 = smov %s905_s17 }
 0x156   :  { %382 = vsyncpa [#allocation3], 1 }
 0x157   :  { %384 = vsyncpa [#allocation3 + $0x1], 1 }
 0x158   :  { %385 = vsyncpa [#allocation4], 1 }
 0x159   :  { %387 = vsyncpa [#allocation4 + $0x1], 1 }

</bundles_post_ra>
